<compile_context>
chip_gen: v7x
topology: tpu7x:2x2x1
jax: 0.10.0
libtpu: 0.0.40
codegen_flags: <defaults>
</compile_context>

<pallas_src>
import jax
import jax.numpy as jnp
from jax.experimental import pallas as pl
from jax.experimental.pallas import tpu as pltpu


def _round_up(x, k):
    return ((x + k - 1) // k) * k


def _ahb_matvec_kernel(inv_h_ref, x_ref, y_ref):
    """One grid step: y_tile = X_tile @ inv_h (MXU matvec).

    inv_h_ref : VMEM (m, 1)       f32 -- grid-invariant column (1 / q_h)
    x_ref     : VMEM (tile_n, m)  f32 -- streamed / pipelined row tile of X
    y_ref     : VMEM (tile_n, 1)  f32 -- output rows for this tile
    """
    y_ref[...] = jnp.dot(
        x_ref[...], inv_h_ref[...], preferred_element_type=jnp.float32
    )


def bayesian_vi_ahb_forward(X, q_mu_h, q_sigma_h, eps):
    """Pallas implementation of bayesian_VI_Ahb.forward.

    X        : (n, m) float32
    q_mu_h   : (m,)   float32   variational mean parameter
    q_sigma_h: ()     float32   variational scale parameter (scalar)
    eps      : (m,)   float32   standard-normal noise (torch.randn analogue)

    Returns (y_pred (n,), q_mu_h, q_sigma_h) exactly like the torch module.
    """
    n, m = X.shape
    X = X.astype(jnp.float32)

    # ---- reparametrization hoisted out of the kernel (m elements, trivial) ----
    # inv_h = 1 / q_h = exp(-(q_mu_h + softplus(q_sigma_h) * eps))
    sp = jax.nn.softplus(jnp.asarray(q_sigma_h, jnp.float32))
    inv_h = jnp.exp(-(q_mu_h.astype(jnp.float32) + sp * eps.astype(jnp.float32)))
    inv_h_col = inv_h.reshape(m, 1)

    # ---- row-tile sizing ------------------------------------------------------
    bytes_per_row = max(m, 1) * 4
    target_tile_bytes = 6 * 1024 * 1024          # ~6 MiB streamed X tile
    x_input = X

    if n < 256:
        # Tiny problem: one aligned tile covers everything; pad at most 7 rows.
        tile_n = _round_up(max(n, 1), 8)
        if tile_n != n:
            x_input = jnp.zeros((tile_n, m), jnp.float32).at[:n, :].set(X)
        grid_n = 1
    else:
        rows_for_target = max(128, target_tile_bytes // bytes_per_row)
        tile_n = min(rows_for_target, 4096)
        tile_n = max(128, (tile_n // 128) * 128)
        # v7x megacore: guarantee >= 2 grid steps so both TensorCores get work.
        half_rows = _round_up((n + 1) // 2, 128)
        tile_n = max(128, min(tile_n, half_rows))   # tile_n <= n for n >= 256
        grid_n = pl.cdiv(n, tile_n)

    n_out = grid_n * tile_n   # output rounded up to whole tiles; sliced to n below

    # TODO(synk): for extremely wide feature dims (m >~ 40K f32 columns) the
    # double-buffered (128, m) X tile no longer fits v7x's 64 MiB VMEM; that
    # regime needs a second "arbitrary" grid axis over m with a VMEM accumulator.

    y = pl.pallas_call(
        _ahb_matvec_kernel,
        out_shape=jax.ShapeDtypeStruct((n_out, 1), jnp.float32),
        grid=(grid_n,),
        in_specs=[
            pl.BlockSpec((m, 1), lambda i: (0, 0)),        # inv_h (grid-invariant)
            pl.BlockSpec((tile_n, m), lambda i: (i, 0)),   # X row tile (streamed)
        ],
        out_specs=pl.BlockSpec((tile_n, 1), lambda i: (i, 0)),
        compiler_params=pltpu.CompilerParams(
            dimension_semantics=("parallel",),             # shard row tiles on v7x
            vmem_limit_bytes=48 * 1024 * 1024,             # headroom under 64 MiB
        ),
        cost_estimate=pl.CostEstimate(
            flops=2 * n * m,
            transcendentals=0,
            bytes_accessed=n * m * 4 + m * 4 + n_out * 4,
        ),
    )(inv_h_col, x_input)

    # Rows beyond n (ragged last tile) are undefined/zero; always slice them off.
    y_pred = y[:n, 0]
    return y_pred, q_mu_h, q_sigma_h


def _reference_forward(X, q_mu_h, q_sigma_h, eps):
    """Pure-JAX reference (mirrors the torch forward)."""
    sp = jax.nn.softplus(q_sigma_h)
    q_h = jnp.exp(q_mu_h + sp * eps)
    return X @ (1.0 / q_h)


if __name__ == "__main__":
    key = jax.random.PRNGKey(0)
    k_a, k_eps = jax.random.split(key)

    # Small synthetic problem consistent with the module:
    #   A: (n, m) nonneg "time spent per region", b: (n,)
    n, m = 16, 32
    A = jnp.abs(jax.random.normal(k_a, (n, m), dtype=jnp.float32)) + 0.1

    # Module-init constants (deterministic, no checkpoint load):
    G = 30.0
    time_to_traverse_gene = 30.0
    trueh = G / time_to_traverse_gene                      # 1.0
    init_h = jnp.ones((m,), jnp.float32) * trueh
    p_sigma_h = 0.5
    # mu_given_h: mu = log(h) - 0.5 * sigma^2
    q_mu_h = jnp.log(init_h) - 0.5 * (p_sigma_h ** 2)      # (m,)
    q_sigma_h = jnp.float32(p_sigma_h)                     # scalar parameter

    # Standard-normal noise for the reparametrization (torch.randn analogue).
    eps = jax.random.normal(k_eps, (m,), dtype=jnp.float32)

    y_pred, mu_out, sigma_out = bayesian_vi_ahb_forward(A, q_mu_h, q_sigma_h, eps)
    jax.block_until_ready(y_pred)

    y_ref = _reference_forward(A, q_mu_h, q_sigma_h, eps)
    assert y_pred.shape == (n,)
    assert jnp.allclose(y_pred, y_ref, rtol=1e-5, atol=1e-5)
    assert jnp.allclose(mu_out, q_mu_h) and jnp.allclose(sigma_out, q_sigma_h)

    print("KERNEL_OK")
</pallas_src>

<mosaic_0001>
module attributes {stable_mosaic.version = 11 : i64} {
  func.func @_ahb_matvec_kernel(%arg0: i32, %arg1: memref<32x1xf32, #tpu.memory_space<vmem>>, %arg2: memref<16x32xf32, #tpu.memory_space<vmem>>, %arg3: memref<16x1xf32, #tpu.memory_space<vmem>>) attributes {dimension_semantics = [#tpu.dimension_semantics<parallel>], iteration_bounds = array<i64: 1>, scalar_prefetch = 0 : i64, scratch_operands = 0 : i64, tpu.core_type = #tpu.core_type<tc>, window_params = [{pipeline_mode = #tpu.pipeline_mode<synchronous>, transform_indices = @transform_0, window_bounds = array<i64: 32, 1>}, {transform_indices = @transform_1, window_bounds = array<i64: 16, 32>}, {transform_indices = @transform_2, window_bounds = array<i64: 16, 1>}]} {
    %c0 = arith.constant 0 : index
    %c0_0 = arith.constant 0 : index
    %0 = vector.load %arg2[%c0, %c0_0] : memref<16x32xf32, #tpu.memory_space<vmem>>, vector<16x32xf32>
    %c0_1 = arith.constant 0 : index
    %c0_2 = arith.constant 0 : index
    %1 = vector.load %arg1[%c0_1, %c0_2] : memref<32x1xf32, #tpu.memory_space<vmem>>, vector<32x1xf32>
    %cst = arith.constant dense<0.000000e+00> : vector<16x1xf32>
    %2 = tpu.matmul %0, %1, %cst {dimension_numbers = #tpu.dot_dimension_numbers<[1], [0], [0], [1], [0, 0, 1, 1], [], []>} : vector<16x32xf32>, vector<32x1xf32>, vector<16x1xf32> -> vector<16x1xf32>
    %c0_3 = arith.constant 0 : index
    %c0_4 = arith.constant 0 : index
    %3 = vector.load %arg3[%c0_3, %c0_4] : memref<16x1xf32, #tpu.memory_space<vmem>>, vector<16x1xf32>
    tpu.vector_store %arg3[%c0_3, %c0_4], %2 {strides = array<i32>} : memref<16x1xf32, #tpu.memory_space<vmem>>, vector<16x1xf32>,
    return
  }
  func.func @transform_0(%arg0: i32) -> (i32, i32) {
    %c0_i32 = arith.constant 0 : i32
    %c0_i32_0 = arith.constant 0 : i32
    %c0_i32_1 = arith.constant 0 : i32
    return %c0_i32, %c0_i32_0 : i32, i32
  }
  func.func @transform_1(%arg0: i32) -> (i32, i32) {
    %c0_i32 = arith.constant 0 : i32
    %c0_i32_0 = arith.constant 0 : i32
    return %arg0, %c0_i32 : i32, i32
  }
  func.func @transform_2(%arg0: i32) -> (i32, i32) {
    %c0_i32 = arith.constant 0 : i32
    %c0_i32_0 = arith.constant 0 : i32
    return %arg0, %c0_i32 : i32, i32
  }
}

</mosaic_0001>

<bundles_post_ra>
// kernel: tpu_custom_call.1
= control target key start
LH: loop header
LB: loop body
LE: loop exit
PB: predicated region body
PF: predicated region fallthrough
CT: control target
= control target key end

     0   :  { %vm17_vm0 = vcmask 261120   ;;  %vm99_vm1 = vcmask 7168   ;;  %s172_s0 = inlined_call_operand.vmem [shape: f32[32,1], index: 0, kind: input, shape index: {}]   ;;  %s173_s1 = inlined_call_operand.vmem [shape: f32[16,32], index: 1, kind: input, shape index: {}]   ;;  %s174_s2 = inlined_call_operand.vmem [shape: f32[16,1], index: 2, kind: output, shape index: {}]  }
   0x1   :  { %v13_v0 = vld [vmem:[%s172_s0] sm:$0xff]  ;;  %v14_v1 = vld [vmem:[%s172_s0 + $0x8] sm:$0xff]  ;;  %v15_v2 = vld [vmem:[%s172_s0 + $0x10] sm:$0xff] }
   0x2   :  { %v125_v3 = vpack.c.bf16 %v14_v1, %v13_v0  ;;  %v16_v4 = vld [vmem:[%s172_s0 + $0x18] sm:$0xff]  ;;  %v11_v5 = vld [vmem:[%s173_s1] sm:$0xff]  ;;  %v12_v7 = vld [vmem:[%s173_s1 + $0x8] sm:$0xff] }
   0x3   :  { %v129_v6 = vpack.c.bf16 %v16_v4, %v15_v2  ;;  %122 = vmatprep.mubr.msk.f32.mxu0 %vm17_vm0, %v11_v5 }
   0x4   :  { %126 = vmatprep.subr.bf16.mxu0 %v125_v3 }
   0x5   :  { %128 = vmatpush3.bf16.msra.mxu0 %v125_v3 }
   0x6   :  { %130 = vmatprep.subr.bf16.mxu0 %v129_v6 }
   0x9   :  { %132 = vmatpush3.bf16.msra.mxu0 %v129_v6 }
   0xc   :  { %123 = vmatmul.mubr.msk.f32.vlgmr.msra.gmra.mrb[0].mxu0 %vm17_vm0, %v12_v7 }
  0xdf   :  { %v124_v8 = vpop.f32.mrb[0].mxu0 }
  0xe0   :  { %101 = vst.msk [vmem:[%s174_s2 + $0x8] sm:$0xff] %vm99_vm1, %v124_v8  ;;  %v90_v9 = vpop.f32.mrb[1].mxu0 }
  0xe1   :  { %100 = vst.msk [vmem:[%s174_s2] sm:$0xff] %vm99_vm1, %v90_v9 }

</bundles_post_ra>
